<compile_context>
chip_gen: v5e
topology: v5e:2x2
jax: 0.10.0
libtpu: 0.0.40
codegen_flags: <defaults>
</compile_context>

<pallas_src>
import functools

import jax
import jax.numpy as jnp
from jax.experimental import pallas as pl
from jax.experimental.pallas import tpu as pltpu


def _round_up(n, m):
    return ((n + m - 1) // m) * m


def _mlp_fused_kernel(*refs, num_layers, use_bf16):
    """Fused MLP on one batch tile (batch on lanes).

    refs = (xT_ref, w0_ref, b0_ref, w1_ref, b1_ref, ..., o_ref)
      xT_ref : (Din, TM)        -- batch on the lane axis
      w_l    : (Dout_l, Din_l)  -- PyTorch orientation, VMEM-resident
      b_l    : (Dout_l, 1)
      o_ref  : (classes, TM)    -- lane-dense output store
    The layer loop is statically unrolled; intermediates live in vregs/VMEM.
    """
    x_ref = refs[0]
    o_ref = refs[-1]
    wb_refs = refs[1:-1]

    h = x_ref[...]                              # (Din, TM) f32
    for l in range(num_layers):
        w = wb_refs[2 * l][...]                 # (Dout_l, Din_l)
        b = wb_refs[2 * l + 1][...]             # (Dout_l, 1), broadcasts over lanes
        if use_bf16:
            # Weights/biases were cast to bf16 once in the wrapper; only the
            # activation is cast here.
            y = jnp.dot(w, h.astype(jnp.bfloat16),
                        preferred_element_type=jnp.float32)
        else:
            y = jnp.dot(w, h, preferred_element_type=jnp.float32,
                        precision=jax.lax.Precision.HIGHEST)
        y = y + b                               # bf16/f32 bias promotes to f32
        if l < num_layers - 1:
            h = jnp.maximum(y, 0.0)             # ReLU (VPU)
        else:
            # PyTorch nn.Softplus (beta=1, threshold=20): linear above 20.
            # exp/log1p ride the EUP slot; the clamp keeps the untaken branch
            # from overflowing.
            h = jnp.where(y > 20.0, y,
                          jnp.log1p(jnp.exp(jnp.minimum(y, 20.0))))
    o_ref[...] = h.astype(o_ref.dtype)


def classifier_forward(x, params, *, tm=2048, use_bf16=False):
    """Forward pass of Classifier: (Linear, ReLU) * (L-1), then Linear+Softplus.

    x: (B, Din) f32.  params: list of (W (Dout_l, Din_l), b (Dout_l,)) in
    PyTorch nn.Linear orientation.  The whole MLP runs in ONE fused Pallas
    kernel, tiled over the batch axis with batch mapped to vreg lanes.
    """
    B, Din = x.shape
    num_layers = len(params)
    classes = params[-1][0].shape[0]

    # Batch tile on the lane axis: multiple of 128, capped at `tm`, and sized
    # ~B/2 so that B > 128 always yields >= 2 grid tiles (both v7x TCs busy).
    TM = min(tm, _round_up(pl.cdiv(B, 2), 128))
    B_pad = _round_up(B, TM)

    # Flip dataflow: batch on lanes.  x^T is (Din, B_pad), zero-padded rows
    # are dead lanes that fall off when we slice the output.
    x_t = jnp.pad(x.T, ((0, 0), (0, B_pad - B)))

    # Flatten params (cast once here if bf16) + whole-array resident BlockSpecs.
    wb_dtype = jnp.bfloat16 if use_bf16 else jnp.float32
    flat_params = []
    in_specs = [pl.BlockSpec((Din, TM), lambda i: (0, i))]     # x^T: batch-tiled
    for (w, b) in params:
        dout, din = w.shape
        flat_params.append(w.astype(wb_dtype))
        flat_params.append(b.reshape(dout, 1).astype(wb_dtype))
        # Constant index_map -> the same block for every batch tile, so the
        # weights/biases stay resident in VMEM across the whole grid.
        in_specs.append(pl.BlockSpec((dout, din), lambda i: (0, 0)))
        in_specs.append(pl.BlockSpec((dout, 1), lambda i: (0, 0)))

    # Explicit VMEM budget: double-buffered x/out tiles + resident params.
    wb_bytes = sum(int(p.size) * p.dtype.itemsize for p in flat_params)
    tile_bytes = (Din * TM + classes * TM) * 4
    vmem_limit = min(64 * 1024 * 1024,
                     max(8 * 1024 * 1024, 2 * (tile_bytes + wb_bytes) + (2 << 20)))

    kernel = functools.partial(
        _mlp_fused_kernel, num_layers=num_layers, use_bf16=use_bf16)

    out_t = pl.pallas_call(
        kernel,
        out_shape=jax.ShapeDtypeStruct((classes, B_pad), jnp.float32),
        grid_spec=pl.GridSpec(
            grid=(B_pad // TM,),
            in_specs=in_specs,
            out_specs=pl.BlockSpec((classes, TM), lambda i: (0, i)),
        ),
        compiler_params=pltpu.CompilerParams(
            dimension_semantics=("parallel",),   # batch tiles -> v7x's 2 TCs
            vmem_limit_bytes=int(vmem_limit),
        ),
    )(x_t, *flat_params)

    return out_t[:, :B].T                        # (B, classes)


def init_classifier_params(key, classifier_dims, classes):
    """Deterministic init mimicking nn.Linear defaults: U(-1/sqrt(fan_in), +).

    Weights are stored in PyTorch orientation (out_features, in_features).
    """
    dims = list(classifier_dims) + [classes]
    params = []
    for i in range(len(dims) - 1):
        fan_in, fan_out = dims[i], dims[i + 1]
        key, kw, kb = jax.random.split(key, 3)
        bound = 1.0 / jnp.sqrt(float(fan_in))
        w = jax.random.uniform(kw, (fan_out, fan_in), jnp.float32, -bound, bound)
        b = jax.random.uniform(kb, (fan_out,), jnp.float32, -bound, bound)
        params.append((w, b))
    return params


def _reference_forward(x, params):
    """Plain-JAX reference (same math, no Pallas)."""
    h = x
    n = len(params)
    for i, (w, b) in enumerate(params):
        h = h @ w.T + b
        if i < n - 1:
            h = jnp.maximum(h, 0.0)
        else:
            h = jnp.where(h > 20.0, h,
                          jnp.log1p(jnp.exp(jnp.minimum(h, 20.0))))
    return h


if __name__ == "__main__":
    key = jax.random.PRNGKey(0)
    key, kx = jax.random.split(key)

    # Small, module-consistent shapes: classifier_dims = [32, 64, 32], classes = 8
    classifier_dims = [32, 64, 32]
    classes = 8
    batch = 8

    x = jax.random.normal(kx, (batch, classifier_dims[0]), jnp.float32)
    params = init_classifier_params(key, classifier_dims, classes)

    out = classifier_forward(x, params)
    out = jax.block_until_ready(out)

    ref = _reference_forward(x, params)
    assert out.shape == (batch, classes)
    assert jnp.allclose(out, ref, atol=1e-5, rtol=1e-5)

    print("KERNEL_OK")
</pallas_src>

<mosaic_0001>
module attributes {stable_mosaic.version = 11 : i64} {
  func.func @_mlp_fused_kernel(%arg0: i32, %arg1: memref<32x128xf32, #tpu.memory_space<vmem>>, %arg2: memref<64x32xf32, #tpu.memory_space<vmem>>, %arg3: memref<64x1xf32, #tpu.memory_space<vmem>>, %arg4: memref<32x64xf32, #tpu.memory_space<vmem>>, %arg5: memref<32x1xf32, #tpu.memory_space<vmem>>, %arg6: memref<8x32xf32, #tpu.memory_space<vmem>>, %arg7: memref<8x1xf32, #tpu.memory_space<vmem>>, %arg8: memref<8x128xf32, #tpu.memory_space<vmem>>) attributes {dimension_semantics = [#tpu.dimension_semantics<parallel>], iteration_bounds = array<i64: 1>, scalar_prefetch = 0 : i64, scratch_operands = 0 : i64, tpu.core_type = #tpu.core_type<tc>, window_params = [{transform_indices = @transform_0, window_bounds = array<i64: 32, 128>}, {pipeline_mode = #tpu.pipeline_mode<synchronous>, transform_indices = @transform_1, window_bounds = array<i64: 64, 32>}, {pipeline_mode = #tpu.pipeline_mode<synchronous>, transform_indices = @transform_2, window_bounds = array<i64: 64, 1>}, {pipeline_mode = #tpu.pipeline_mode<synchronous>, transform_indices = @transform_3, window_bounds = array<i64: 32, 64>}, {pipeline_mode = #tpu.pipeline_mode<synchronous>, transform_indices = @transform_4, window_bounds = array<i64: 32, 1>}, {pipeline_mode = #tpu.pipeline_mode<synchronous>, transform_indices = @transform_5, window_bounds = array<i64: 8, 32>}, {pipeline_mode = #tpu.pipeline_mode<synchronous>, transform_indices = @transform_6, window_bounds = array<i64: 8, 1>}, {transform_indices = @transform_7, window_bounds = array<i64: 8, 128>}]} {
    %c0 = arith.constant 0 : index
    %c0_0 = arith.constant 0 : index
    %0 = vector.load %arg1[%c0, %c0_0] : memref<32x128xf32, #tpu.memory_space<vmem>>, vector<32x128xf32>
    %c0_1 = arith.constant 0 : index
    %c0_2 = arith.constant 0 : index
    %1 = vector.load %arg2[%c0_1, %c0_2] : memref<64x32xf32, #tpu.memory_space<vmem>>, vector<64x32xf32>
    %c0_3 = arith.constant 0 : index
    %c0_4 = arith.constant 0 : index
    %2 = vector.load %arg3[%c0_3, %c0_4] : memref<64x1xf32, #tpu.memory_space<vmem>>, vector<64x1xf32>
    %cst = arith.constant dense<0.000000e+00> : vector<64x128xf32>
    %3 = tpu.matmul %1, %0, %cst {dimension_numbers = #tpu.dot_dimension_numbers<[1], [0], [0], [1], [0, 0, 1, 1], [], []>, precision = #tpu.contract_precision<fp32>} : vector<64x32xf32>, vector<32x128xf32>, vector<64x128xf32> -> vector<64x128xf32>
    %4 = vector.broadcast %2 : vector<64x1xf32> to vector<64x128xf32>
    %5 = arith.addf %3, %4 : vector<64x128xf32>
    %cst_5 = arith.constant 0.000000e+00 : f32
    %6 = vector.broadcast %cst_5 : f32 to vector<64x128xf32>
    %7 = arith.maximumf %5, %6 : vector<64x128xf32>
    %c0_6 = arith.constant 0 : index
    %c0_7 = arith.constant 0 : index
    %8 = vector.load %arg4[%c0_6, %c0_7] : memref<32x64xf32, #tpu.memory_space<vmem>>, vector<32x64xf32>
    %c0_8 = arith.constant 0 : index
    %c0_9 = arith.constant 0 : index
    %9 = vector.load %arg5[%c0_8, %c0_9] : memref<32x1xf32, #tpu.memory_space<vmem>>, vector<32x1xf32>
    %cst_10 = arith.constant dense<0.000000e+00> : vector<32x128xf32>
    %10 = tpu.matmul %8, %7, %cst_10 {dimension_numbers = #tpu.dot_dimension_numbers<[1], [0], [0], [1], [0, 0, 1, 1], [], []>, precision = #tpu.contract_precision<fp32>} : vector<32x64xf32>, vector<64x128xf32>, vector<32x128xf32> -> vector<32x128xf32>
    %11 = vector.broadcast %9 : vector<32x1xf32> to vector<32x128xf32>
    %12 = arith.addf %10, %11 : vector<32x128xf32>
    %cst_11 = arith.constant 0.000000e+00 : f32
    %13 = vector.broadcast %cst_11 : f32 to vector<32x128xf32>
    %14 = arith.maximumf %12, %13 : vector<32x128xf32>
    %c0_12 = arith.constant 0 : index
    %c0_13 = arith.constant 0 : index
    %15 = vector.load %arg6[%c0_12, %c0_13] : memref<8x32xf32, #tpu.memory_space<vmem>>, vector<8x32xf32>
    %c0_14 = arith.constant 0 : index
    %c0_15 = arith.constant 0 : index
    %16 = vector.load %arg7[%c0_14, %c0_15] : memref<8x1xf32, #tpu.memory_space<vmem>>, vector<8x1xf32>
    %cst_16 = arith.constant dense<0.000000e+00> : vector<8x128xf32>
    %17 = tpu.matmul %15, %14, %cst_16 {dimension_numbers = #tpu.dot_dimension_numbers<[1], [0], [0], [1], [0, 0, 1, 1], [], []>, precision = #tpu.contract_precision<fp32>} : vector<8x32xf32>, vector<32x128xf32>, vector<8x128xf32> -> vector<8x128xf32>
    %18 = vector.broadcast %16 : vector<8x1xf32> to vector<8x128xf32>
    %19 = arith.addf %17, %18 : vector<8x128xf32>
    %cst_17 = arith.constant 2.000000e+01 : f32
    %20 = vector.broadcast %cst_17 : f32 to vector<8x128xf32>
    %21 = arith.cmpf ogt, %19, %20 : vector<8x128xf32>
    %cst_18 = arith.constant 2.000000e+01 : f32
    %22 = vector.broadcast %cst_18 : f32 to vector<8x128xf32>
    %23 = arith.minimumf %19, %22 : vector<8x128xf32>
    %24 = math.exp %23 : vector<8x128xf32>
    %25 = math.log1p %24 : vector<8x128xf32>
    %26 = arith.select %21, %19, %25 : vector<8x128xi1>, vector<8x128xf32>
    %c0_19 = arith.constant 0 : index
    %c0_20 = arith.constant 0 : index
    %27 = vector.load %arg8[%c0_19, %c0_20] : memref<8x128xf32, #tpu.memory_space<vmem>>, vector<8x128xf32>
    tpu.vector_store %arg8[%c0_19, %c0_20], %26 {strides = array<i32>} : memref<8x128xf32, #tpu.memory_space<vmem>>, vector<8x128xf32>,
    return
  }
  func.func @transform_0(%arg0: i32) -> (i32, i32) {
    %c0_i32 = arith.constant 0 : i32
    %c0_i32_0 = arith.constant 0 : i32
    return %c0_i32, %arg0 : i32, i32
  }
  func.func @transform_1(%arg0: i32) -> (i32, i32) {
    %c0_i32 = arith.constant 0 : i32
    %c0_i32_0 = arith.constant 0 : i32
    %c0_i32_1 = arith.constant 0 : i32
    return %c0_i32, %c0_i32_0 : i32, i32
  }
  func.func @transform_2(%arg0: i32) -> (i32, i32) {
    %c0_i32 = arith.constant 0 : i32
    %c0_i32_0 = arith.constant 0 : i32
    %c0_i32_1 = arith.constant 0 : i32
    return %c0_i32, %c0_i32_0 : i32, i32
  }
  func.func @transform_3(%arg0: i32) -> (i32, i32) {
    %c0_i32 = arith.constant 0 : i32
    %c0_i32_0 = arith.constant 0 : i32
    %c0_i32_1 = arith.constant 0 : i32
    return %c0_i32, %c0_i32_0 : i32, i32
  }
  func.func @transform_4(%arg0: i32) -> (i32, i32) {
    %c0_i32 = arith.constant 0 : i32
    %c0_i32_0 = arith.constant 0 : i32
    %c0_i32_1 = arith.constant 0 : i32
    return %c0_i32, %c0_i32_0 : i32, i32
  }
  func.func @transform_5(%arg0: i32) -> (i32, i32) {
    %c0_i32 = arith.constant 0 : i32
    %c0_i32_0 = arith.constant 0 : i32
    %c0_i32_1 = arith.constant 0 : i32
    return %c0_i32, %c0_i32_0 : i32, i32
  }
  func.func @transform_6(%arg0: i32) -> (i32, i32) {
    %c0_i32 = arith.constant 0 : i32
    %c0_i32_0 = arith.constant 0 : i32
    %c0_i32_1 = arith.constant 0 : i32
    return %c0_i32, %c0_i32_0 : i32, i32
  }
  func.func @transform_7(%arg0: i32) -> (i32, i32) {
    %c0_i32 = arith.constant 0 : i32
    %c0_i32_0 = arith.constant 0 : i32
    return %c0_i32, %arg0 : i32, i32
  }
}

</mosaic_0001>

<bundles_post_ra>
// kernel: tpu_custom_call.1
= control target key start
LH: loop header
LB: loop body
LE: loop exit
PB: predicated region body
PF: predicated region fallthrough
CT: control target
= control target key end

     0   :  { %vm87_vm0 = vcmask 261120   ;;  %v1158_v6 = vmov 0   ;;  %s1503_s0 = inlined_call_operand.vmem [shape: f32[32,128], index: 0, kind: input, shape index: {}]   ;;  %s1504_s1 = inlined_call_operand.vmem [shape: f32[64,32], index: 1, kind: input, shape index: {}]   ;;  %s1505_s2 = inlined_call_operand.vmem [shape: f32[64,1], index: 2, kind: input, shape index: {}]   ;;  %s1506_s3 = inlined_call_operand.vmem [shape: f32[32,64], index: 3, kind: input, shape index: {}]   ;;  %s1507_s4 = inlined_call_operand.vmem [shape: f32[32,1], index: 4, kind: input, shape index: {}]   ;;  %s1508_s5 = inlined_call_operand.vmem [shape: f32[8,32], index: 5, kind: input, shape index: {}]   ;;  %s1509_s6 = inlined_call_operand.vmem [shape: f32[8,1], index: 6, kind: input, shape index: {}]   ;;  %s1510_s7 = inlined_call_operand.hbm [shape: f32[8,128], index: 7, kind: output, shape index: {}]  }
   0x1   :  { %v30_v0 = vld [vmem:[%s1503_s0 + $0x18] sm:$0xff]  ;;  %v29_v1 = vld [vmem:[%s1503_s0 + $0x10] sm:$0xff]  ;;  %v28_v2 = vld [vmem:[%s1503_s0 + $0x8] sm:$0xff]  ;;  %1126 = vset.pattern.permute.xlu1 %v1158_v6  ;;  %1125 = vset.pattern.permute.xlu0 %v1158_v6 }
   0x2   :  { %v1209_v3 = vand.u32 4294901760, %v30_v0  ;;  %v1211_v4 = vand.u32 4294901760, %v29_v1  ;;  %v1213_v5 = vand.u32 4294901760, %v28_v2  ;;  %v44_v7 = vld [vmem:[%s1505_s2 + $0x28] sm:$0xff]  ;;  %v27_v8 = vld [vmem:[%s1503_s0] sm:$0xff]  ;;  %v46_v12 = vld [vmem:[%s1505_s2 + $0x38] sm:$0xff]  ;;  %1127 = vset.pattern.permute.xlu2 %v1158_v6 }
   0x3   :  { %v31_v9 = vld [vmem:[%s1504_s1] sm:$0xff]  ;;  %74 = vperm.xlu1 %1126, %v44_v7   ;;  %v1224_v10 = vand.u32 4294901760, %v27_v8  ;;  %v32_v13 = vld [vmem:[%s1504_s1 + $0x8] sm:$0xff]  ;;  %v33_v18 = vld [vmem:[%s1504_s1 + $0x10] sm:$0xff]  ;;  %84 = vperm.xlu0 %1125, %v46_v12  }
   0x4   :  { %v89_v11 = vsel %vm87_vm0, %v31_v9, 0  ;;  %125 = vmatpush.msra.mxu0 %v1209_v3  ;;  %v210_v14 = vsub.f32 %v30_v0, %v1209_v3  ;;  %v216_v15 = vsub.f32 %v29_v1, %v1211_v4  ;;  %344 = vmatpush.msra.mxu3 %v1209_v3  ;;  %v1238_v16 = vsub.f32 %v28_v2, %v1213_v5 }
   0x5   :  { %v1240_v17 = vand.u32 4294901760, %v89_v11  ;;  %v1246_v19 = vsub.f32 %v27_v8, %v1224_v10  ;;  %v92_v20 = vsel %vm87_vm0, %v32_v13, 0  ;;  %v95_v21 = vsel %vm87_vm0, %v33_v18, 0 }
   0x6   :  { %127 = vmatpush.msra.mxu0 %v1211_v4  ;;  %280 = vmatpush.msra.mxu2 %v210_v14  ;;  %v211_v22 = vand.u32 4294901760, %v210_v14  ;;  %v217_v24 = vand.u32 4294901760, %v216_v15  ;;  %v223_v25 = vand.u32 4294901760, %v1238_v16 }
   0x7   :  { %v133_v23 = vsub.f32 %v89_v11, %v1240_v17 }
   0x8   :  { %12 = vsyncpa [#allocation3], 0  ;;  %346 = vmatpush.msra.mxu3 %v1211_v4  ;;  %v229_v26 = vand.u32 4294901760, %v1246_v19  ;;  %v1255_v27 = vand.u32 4294901760, %v92_v20  ;;  %129 = vmatpush.msra.mxu0 %v1213_v5  ;;  %v212_v28 = vsub.f32 %v210_v14, %v211_v22  ;;  %v218_v30 = vsub.f32 %v216_v15, %v217_v24  ;;  %v43_v32 = vld [vmem:[%s1505_s2 + $0x20] sm:$0xff]  ;;  %v45_v42 = vld [vmem:[%s1505_s2 + $0x30] sm:$0xff] }
   0x9   :  { %283 = vmatpush.msra.mxu2 %v216_v15  ;;  %v134_v29 = vand.u32 4294901760, %v133_v23  ;;  %v224_v31 = vsub.f32 %v1238_v16, %v223_v25  ;;  %v1264_v34 = vand.u32 4294901760, %v95_v21  ;;  %v34_v43 = vld [vmem:[%s1504_s1 + $0x18] sm:$0xff]  ;;  %v39_v48 = vld [vmem:[%s1505_s2] sm:$0xff]  ;;  %v40_v52 = vld [vmem:[%s1505_s2 + $0x8] sm:$0xff]  ;;  %vm550_vm1 = vcmask 523264  }
   0xa   :  { %348 = vmatpush.msra.mxu3 %v1213_v5  ;;  %v141_v33 = vsub.f32 %v92_v20, %v1255_v27  ;;  %131 = vmatpush.msra.mxu0 %v1224_v10  ;;  %v213_v35 = vand.u32 4294901760, %v212_v28  ;;  %v219_v37 = vand.u32 4294901760, %v218_v30  ;;  %v230_v38 = vsub.f32 %v1246_v19, %v229_v26  ;;  %v35_v53 = vld [vmem:[%s1504_s1 + $0x20] sm:$0xff]  ;;  %v42_v60 = vld [vmem:[%s1505_s2 + $0x18] sm:$0xff]  ;;  %v36_v61 = vld [vmem:[%s1504_s1 + $0x28] sm:$0xff]  ;;  %s1114_s11 = sshll.u32 %s1510_s7, 4  ;;  %s1115_s11 = int_to_ptr.hbm [resolvable:$true] %s1114_s11 }
   0xb   :  { %286 = vmatpush.msra.mxu2 %v1238_v16  ;;  %v135_v36 = vsub.f32 %v133_v23, %v134_v29  ;;  %69 = vperm.xlu1 %1126, %v43_v32   ;;  %v225_v41 = vand.u32 4294901760, %v224_v31  ;;  %v149_v46 = vsub.f32 %v95_v21, %v1264_v34  ;;  %v98_v47 = vsel %vm87_vm0, %v34_v43, 0  ;;  %v38_v12 = vld [vmem:[%s1504_s1 + $0x38] sm:$0xff]  ;;  %v898_v28 = vld [vmem:[%s1509_s6] sm:$0xff] }
   0xc   :  { %350 = vmatpush.msra.mxu3 %v1224_v10  ;;  %v142_v39 = vand.u32 4294901760, %v141_v33  ;;  %214 = vmatpush.msra.mxu1 %v213_v35  ;;  %v231_v44 = vand.u32 4294901760, %v230_v38  ;;  %v1282_v51 = vand.u32 4294901760, %v98_v47  ;;  %v101_v56 = vsel %vm87_vm0, %v35_v53, 0  ;;  %v529_v30 = vld [vmem:[%s1507_s4 + $0x18] sm:$0xff]  ;;  %v526_v32 = vld [vmem:[%s1507_s4] sm:$0xff] }
   0xd   :  { %v136_v40 = vand.u32 4294901760, %v135_v36  ;;  %289 = vmatpush.msra.mxu2 %v1246_v19  ;;  %354 = vmatmul.f32.vlgmr.msra.gmra.mxu3 %v134_v29  ;;  %v150_v50 = vand.u32 4294901760, %v149_v46  ;;  %v1296_v59 = vand.u32 4294901760, %v101_v56  ;;  %v104_v0 = vsel %vm87_vm0, %v36_v61, 0 }
   0xe   :  { %292 = vmatmul.f32.vlgmr.msra.gmra.mxu2 %v133_v23  ;;  %220 = vmatpush.msra.mxu1 %v219_v37  ;;  %v143_v45 = vsub.f32 %v141_v33, %v142_v39  ;;  %v157_v55 = vsub.f32 %v98_v47, %v1282_v51  ;;  %v110_v15 = vsel %vm87_vm0, %v38_v12, 0 }
   0xf   :  { %137 = vmatmul.f32.vlgmr.msra.gmra.mxu0 %v136_v40  ;;  %79 = vperm.xlu0 %1125, %v45_v42   ;;  %v151_v54 = vsub.f32 %v149_v46, %v150_v50  ;;  %v165_v63 = vsub.f32 %v101_v56, %v1296_v59  ;;  %v188_v19 = vand.u32 4294901760, %v110_v15 }
  0x10   :  { %415 = vmatpush.msrb.mxu0 %v211_v22  ;;  %226 = vmatpush.msra.mxu1 %v225_v41  ;;  %v144_v49 = vand.u32 4294901760, %v143_v45  ;;  %v158_v58 = vand.u32 4294901760, %v157_v55 }
  0x11   :  { %v152_v57 = vand.u32 4294901760, %v151_v54  ;;  %64 = vperm.xlu2 %1127, %v42_v60   ;;  %v166_v2 = vand.u32 4294901760, %v165_v63  ;;  %v189_v21 = vsub.f32 %v110_v15, %v188_v19 }
  0x12   :  { %419 = vmatpush.msrb.mxu0 %v217_v24  ;;  %232 = vmatpush.msra.mxu1 %v231_v44  ;;  %v159_v62 = vsub.f32 %v157_v55, %v158_v58 }
  0x13   :  { %234 = vmatmul.f32.vlgmr.msra.gmra.mxu1 %v1240_v17  ;;  %49 = vperm.xlu1 %1126, %v39_v48   ;;  %v167_v6 = vsub.f32 %v165_v63, %v166_v2  ;;  %v190_v23 = vand.u32 4294901760, %v189_v21 }
  0x14   :  { %474 = vmatpush.msrb.mxu1 %v1209_v3  ;;  %423 = vmatpush.msrb.mxu0 %v223_v25  ;;  %v160_v1 = vand.u32 4294901760, %v159_v62  ;;  %v172_v3 = vand.u32 4294901760, %v104_v0 }
  0x15   :  { %360 = vmatmul.f32.gmra.mxu3 %v142_v39  ;;  %v168_v9 = vand.u32 4294901760, %v167_v6  ;;  %v191_v24 = vsub.f32 %v189_v21, %v190_v23 }
  0x16   :  { %297 = vmatmul.f32.gmra.mxu2 %v141_v33  ;;  %476 = vmatpush.msrb.mxu1 %v1211_v4  ;;  %v41_v4 = vld [vmem:[%s1505_s2 + $0x10] sm:$0xff]  ;;  %v173_v7 = vsub.f32 %v104_v0, %v172_v3 }
  0x17   :  { %145 = vmatmul.f32.gmra.mxu0 %v144_v49  ;;  %54 = vperm.xlu0 %1125, %v40_v52   ;;  %v192_v25 = vand.u32 4294901760, %v191_v24 }
  0x18   :  { %427 = vmatpush.msrb.mxu0 %v229_v26  ;;  %478 = vmatpush.msrb.mxu1 %v1213_v5  ;;  %v37_v5 = vld [vmem:[%s1504_s1 + $0x30] sm:$0xff] }
  0x19   :  { %59 = vperm.xlu2 %1127, %v41_v4   ;;  %v107_v8 = vsel %vm87_vm0, %v37_v5, 0  ;;  %v528_v26 = vld [vmem:[%s1507_s4 + $0x10] sm:$0xff] }
  0x1a   :  { %480 = vmatpush.msrb.mxu1 %v1224_v10  ;;  %v174_v10 = vand.u32 4294901760, %v173_v7  ;;  %v180_v11 = vand.u32 4294901760, %v107_v8 }
  0x1b   :  { %238 = vmatmul.f32.gmra.mxu1 %v1255_v27 }
  0x1c   :  { %v175_v13 = vsub.f32 %v173_v7, %v174_v10  ;;  %v181_v14 = vsub.f32 %v107_v8, %v180_v11 }
  0x1d   :  { %366 = vmatmul.f32.gmra.mxu3 %v150_v50 }
  0x1e   :  { %302 = vmatmul.f32.gmra.mxu2 %v149_v46  ;;  %v176_v16 = vand.u32 4294901760, %v175_v13  ;;  %v182_v18 = vand.u32 4294901760, %v181_v14 }
  0x1f   :  { %153 = vmatmul.f32.gmra.mxu0 %v152_v57  ;;  %542 = vperm.xlu0 %1125, %v528_v26  }
  0x20   :  { %v183_v20 = vsub.f32 %v181_v14, %v182_v18 }
  0x21   :  { %547 = vperm.xlu2 %1127, %v529_v30  }
  0x22   :  { %v184_v22 = vand.u32 4294901760, %v183_v20 }
  0x23   :  { %242 = vmatmul.f32.gmra.mxu1 %v1264_v34 }
  0x25   :  { %372 = vmatmul.f32.gmra.mxu3 %v158_v58 }
  0x26   :  { %307 = vmatmul.f32.gmra.mxu2 %v157_v55 }
  0x27   :  { %161 = vmatmul.f32.gmra.mxu0 %v160_v1  ;;  %901 = vperm.xlu0 %1125, %v898_v28  }
  0x29   :  { %532 = vperm.xlu2 %1127, %v526_v32  }
  0x2b   :  { %246 = vmatmul.f32.gmra.mxu1 %v1282_v51 }
  0x2d   :  { %378 = vmatmul.f32.gmra.mxu3 %v166_v2 }
  0x2e   :  { %312 = vmatmul.f32.gmra.mxu2 %v165_v63 }
  0x2f   :  { %169 = vmatmul.f32.gmra.mxu0 %v168_v9 }
  0x33   :  { %250 = vmatmul.f32.gmra.mxu1 %v1296_v59 }
  0x35   :  { %384 = vmatmul.f32.gmra.mxu3 %v174_v10 }
  0x36   :  { %317 = vmatmul.f32.gmra.mxu2 %v173_v7 }
  0x37   :  { %177 = vmatmul.f32.gmra.mxu0 %v176_v16 }
  0x3b   :  { %254 = vmatmul.f32.gmra.mxu1 %v172_v3 }
  0x3d   :  { %390 = vmatmul.f32.gmra.mxu3 %v182_v18 }
  0x3e   :  { %322 = vmatmul.f32.gmra.mxu2 %v181_v14 }
  0x3f   :  { %185 = vmatmul.f32.gmra.mxu0 %v184_v22 }
  0x43   :  { %258 = vmatmul.f32.gmra.mxu1 %v180_v11 }
  0x45   :  { %396 = vmatmul.f32.gmra.mxu3 %v190_v23 }
  0x46   :  { %327 = vmatmul.f32.gmra.mxu2 %v189_v21 }
  0x47   :  { %193 = vmatmul.f32.gmra.mxu0 %v192_v25 }
  0x4b   :  { %262 = vmatmul.f32.gmra.mxu1 %v188_v19 }
  0x4f   :  { %429 = vmatmul.f32.vlgmr.msrb.gmra.mxu0 %v1240_v17 }
  0x53   :  { %482 = vmatmul.f32.vlgmr.msrb.gmra.mxu1 %v1240_v17  ;;  %v527_v17 = vld [vmem:[%s1507_s4 + $0x8] sm:$0xff] }
  0x54   :  { %537 = vperm.xlu1 %1126, %v527_v17  }
  0x57   :  { %433 = vmatmul.f32.gmra.mxu0 %v1255_v27 }
  0x5b   :  { %486 = vmatmul.f32.gmra.mxu1 %v1255_v27 }
  0x5f   :  { %437 = vmatmul.f32.gmra.mxu0 %v1264_v34 }
  0x63   :  { %490 = vmatmul.f32.gmra.mxu1 %v1264_v34 }
  0x67   :  { %441 = vmatmul.f32.gmra.mxu0 %v1282_v51 }
  0x6b   :  { %494 = vmatmul.f32.gmra.mxu1 %v1282_v51  ;;  %v65_v37 = vpop.permute.xlu2 %64 }
  0x6f   :  { %445 = vmatmul.f32.gmra.mxu0 %v1296_v59 }
  0x73   :  { %498 = vmatmul.f32.gmra.mxu1 %v1296_v59  ;;  %v60_v49 = vpop.permute.xlu2 %59 }
  0x75   :  { %v75_v27 = vpop.permute.xlu1 %74  ;;  %v1341_v29 = vpop.permute.xlu0 %84 }
  0x77   :  { %449 = vmatmul.f32.gmra.mxu0 %v172_v3 }
  0x7b   :  { %502 = vmatmul.f32.gmra.mxu1 %v172_v3 }
  0x7d   :  { %v70_v31 = vpop.permute.xlu1 %69 }
  0x7f   :  { %453 = vmatmul.f32.gmra.mxu0 %v180_v11 }
  0x81   :  { %v80_v33 = vpop.permute.xlu0 %79 }
  0x83   :  { %506 = vmatmul.f32.gmra.mxu1 %v180_v11 }
  0x85   :  { %v50_v34 = vpop.permute.xlu1 %49 }
  0x87   :  { %457 = vmatmul.f32.gmra.mxu0 %v188_v19 }
  0x89   :  { %v55_v42 = vpop.permute.xlu0 %54 }
  0x8b   :  { %510 = vmatmul.f32.gmra.mxu1 %v188_v19 }
  0x8c   :  { %v138_v35 = vpop.f32.mrf.mxu0 }
  0x8d   :  { %v139_v36 = vadd.f32 %v138_v35, %v50_v34 }
  0x90   :  { %v235_v38 = vpop.f32.mrf.mxu1  ;;  %v355_v41 = vpop.f32.mrf.mxu3 }
  0x91   :  { %v293_v39 = vpop.f32.mrf.mxu2  ;;  %v236_v40 = vadd.f32 %v235_v38, %v139_v36 }
  0x93   :  { %v294_v44 = vadd.f32 %v293_v39, %v236_v40 }
  0x94   :  { %v146_v43 = vpop.f32.mrf.mxu0 }
  0x95   :  { %v356_v45 = vadd.f32 %v355_v41, %v294_v44  ;;  %v147_v46 = vadd.f32 %v146_v43, %v55_v42 }
  0x98   :  { %v239_v47 = vpop.f32.mrf.mxu1  ;;  %v361_v8 = vpop.f32.mrf.mxu3 }
  0x99   :  { %v1349_v48 = vadd.f32 %v239_v47, %v147_v46  ;;  %v298_v6 = vpop.f32.mrf.mxu2 }
  0x9c   :  { %v154_v50 = vpop.f32.mrf.mxu0 }
  0x9d   :  { %v155_v51 = vadd.f32 %v154_v50, %v60_v49  ;;  %v299_v50 = vadd.f32 %v298_v6, %v1349_v48  ;;  %v522_v48 = vld [vmem:[%s1506_s3] sm:$0xff] }
  0xa0   :  { %v243_v52 = vpop.f32.mrf.mxu1  ;;  %v367_v13 = vpop.f32.mrf.mxu3 }
  0xa1   :  { %v244_v53 = vadd.f32 %v243_v52, %v155_v51  ;;  %v303_v11 = vpop.f32.mrf.mxu2 }
  0xa3   :  { %v304_v44 = vadd.f32 %v303_v11, %v244_v53 }
  0xa4   :  { %v162_v54 = vpop.f32.mrf.mxu0 }
  0xa5   :  { %v163_v55 = vadd.f32 %v162_v54, %v65_v37 }
  0xa8   :  { %v247_v56 = vpop.f32.mrf.mxu1  ;;  %v373_v20 = vpop.f32.mrf.mxu3 }
  0xa9   :  { %v248_v57 = vadd.f32 %v247_v56, %v163_v55  ;;  %v308_v18 = vpop.f32.mrf.mxu2 }
  0xab   :  { %v309_v40 = vadd.f32 %v308_v18, %v248_v57 }
  0xac   :  { %v170_v58 = vpop.f32.mrf.mxu0 }
  0xad   :  { %v171_v59 = vadd.f32 %v170_v58, %v70_v31  ;;  %v374_v54 = vadd.f32 %v373_v20, %v309_v40  ;;  %v368_v58 = vadd.f32 %v367_v13, %v304_v44 }
  0xb0   :  { %v251_v60 = vpop.f32.mrf.mxu1  ;;  %v379_v25 = vpop.f32.mrf.mxu3 }
  0xb1   :  { %v252_v61 = vadd.f32 %v251_v60, %v171_v59  ;;  %v313_v22 = vpop.f32.mrf.mxu2 }
  0xb3   :  { %v314_v38 = vadd.f32 %v313_v22, %v252_v61 }
  0xb4   :  { %v178_v62 = vpop.f32.mrf.mxu0 }
  0xb5   :  { %v179_v63 = vadd.f32 %v178_v62, %v75_v27  ;;  %v362_v62 = vadd.f32 %v361_v8, %v299_v50 }
  0xb8   :  { %v255_v0 = vpop.f32.mrf.mxu1  ;;  %v385_v27 = vpop.f32.mrf.mxu3 }
  0xb9   :  { %v256_v1 = vadd.f32 %v255_v0, %v179_v63  ;;  %v318_v28 = vpop.f32.mrf.mxu2 }
  0xbb   :  { %v319_v35 = vadd.f32 %v318_v28, %v256_v1 }
  0xbc   :  { %v186_v2 = vpop.f32.mrf.mxu0 }
  0xbd   :  { %v187_v3 = vadd.f32 %v186_v2, %v80_v33  ;;  %v386_v41 = vadd.f32 %v385_v27, %v319_v35 }
  0xc0   :  { %v259_v4 = vpop.f32.mrf.mxu1  ;;  %v391_v33 = vpop.f32.mrf.mxu3 }
  0xc1   :  { %v260_v5 = vadd.f32 %v259_v4, %v187_v3  ;;  %v323_v32 = vpop.f32.mrf.mxu2 }
  0xc3   :  { %v324_v37 = vadd.f32 %v323_v32, %v260_v5 }
  0xc4   :  { %v194_v7 = vpop.f32.mrf.mxu0 }
  0xc5   :  { %v195_v36 = vadd.f32 %v194_v7, %v1341_v29  ;;  %v392_v42 = vadd.f32 %v391_v33, %v324_v37 }
  0xc8   :  { %v263_v9 = vpop.f32.mrf.mxu1  ;;  %v397_v59 = vpop.f32.mrf.mxu3 }
  0xc9   :  { %v264_v43 = vadd.f32 %v263_v9, %v195_v36  ;;  %v328_v46 = vpop.f32.mrf.mxu2 }
  0xcb   :  { %v329_v55 = vadd.f32 %v328_v46, %v264_v43 }
  0xcc   :  { %v430_v10 = vpop.f32.mrf.mxu0 }
  0xcd   :  { %v431_v12 = vadd.f32 %v430_v10, %v356_v45  ;;  %v380_v45 = vadd.f32 %v379_v25, %v314_v38  ;;  %v398_v0 = vadd.f32 %v397_v59, %v329_v55  ;;  %v552_v10 = vsel %vm550_vm1, %v522_v48, 0  ;;  %v523_v25 = vld [vmem:[%s1506_s3 + $0x8] sm:$0xff] }
  0xce   :  { %v1368_v22 = vand.u32 4294901760, %v552_v10  ;;  %v555_v32 = vsel %vm550_vm1, %v523_v25, 0 }
  0xd0   :  { %v483_v14 = vpop.f32.mrf.mxu1 }
  0xd1   :  { %v1351_v15 = vadd.f32 %v483_v14, %v431_v12 }
  0xd4   :  { %v434_v16 = vpop.f32.mrf.mxu0 }
  0xd5   :  { %v435_v5 = vadd.f32 %v434_v16, %v362_v62 }
  0xd8   :  { %v487_v19 = vpop.f32.mrf.mxu1 }
  0xd9   :  { %v488_v8 = vadd.f32 %v487_v19, %v435_v5 }
  0xdb   :  { %v515_v16 = vmax.f32 %v488_v8, 0.0 }
  0xdc   :  { %v438_v21 = vpop.f32.mrf.mxu0 }
  0xdd   :  { %v439_v63 = vadd.f32 %v438_v21, %v368_v58 }
  0xe0   :  { %v491_v23 = vpop.f32.mrf.mxu1 }
  0xe1   :  { %v492_v3 = vadd.f32 %v491_v23, %v439_v63 }
  0xe3   :  { %v516_v14 = vmax.f32 %v492_v3, 0.0 }
  0xe4   :  { %v442_v24 = vpop.f32.mrf.mxu0 }
  0xe5   :  { %v443_v57 = vadd.f32 %v442_v24, %v374_v54  ;;  %v1381_v28 = vand.u32 4294901760, %v516_v14 }
  0xe7   :  { %v1408_v37 = vsub.f32 %v516_v14, %v1381_v28 }
  0xe8   :  { %v495_v26 = vpop.f32.mrf.mxu1 }
  0xe9   :  { %v496_v1 = vadd.f32 %v495_v26, %v443_v57  ;;  %v514_v26 = vmax.f32 %v1351_v15, 0.0  ;;  %v1396_v15 = vand.u32 4294901760, %v515_v16  ;;  %v660_v50 = vand.u32 4294901760, %v1408_v37 }
  0xeb   :  { %v517_v11 = vmax.f32 %v496_v1, 0.0  ;;  %v1405_v36 = vand.u32 4294901760, %v514_v26  ;;  %v1419_v43 = vsub.f32 %v515_v16, %v1396_v15 }
  0xec   :  { %v446_v17 = vpop.f32.mrf.mxu0 }
  0xed   :  { %v447_v51 = vadd.f32 %v446_v17, %v380_v45  ;;  %v1370_v23 = vand.u32 4294901760, %v517_v11  ;;  %v666_v59 = vand.u32 4294901760, %v1419_v43 }
  0xef   :  { %v1399_v33 = vsub.f32 %v517_v11, %v1370_v23  ;;  %v667_v1 = vsub.f32 %v1419_v43, %v666_v59 }
  0xf0   :  { %v499_v30 = vpop.f32.mrf.mxu1 }
  0xf1   :  { %v500_v60 = vadd.f32 %v499_v30, %v447_v51  ;;  %v654_v46 = vand.u32 4294901760, %v1399_v33 }
  0xf3   :  { %v518_v4 = vmax.f32 %v500_v60, 0.0  ;;  %v655_v58 = vsub.f32 %v1399_v33, %v654_v46  ;;  %v661_v60 = vsub.f32 %v1408_v37, %v660_v50 }
  0xf4   :  { %v450_v31 = vpop.f32.mrf.mxu0 }
  0xf5   :  { %v451_v47 = vadd.f32 %v450_v31, %v386_v41  ;;  %v1363_v18 = vand.u32 4294901760, %v518_v4  ;;  %v1393_v31 = vsub.f32 %v552_v10, %v1368_v22  ;;  %v662_v48 = vand.u32 4294901760, %v661_v60 }
  0xf7   :  { %v1384_v17 = vsub.f32 %v518_v4, %v1363_v18  ;;  %v589_v41 = vand.u32 4294901760, %v1393_v31 }
  0xf8   :  { %v503_v34 = vpop.f32.mrf.mxu1 }
  0xf9   :  { %v504_v56 = vadd.f32 %v503_v34, %v451_v47  ;;  %v648_v38 = vand.u32 4294901760, %v1384_v17  ;;  %v524_v47 = vld [vmem:[%s1506_s3 + $0x10] sm:$0xff]  ;;  %v590_v54 = vsub.f32 %v1393_v31, %v589_v41 }
  0xfb   :  { %v519_v2 = vmax.f32 %v504_v56, 0.0  ;;  %v558_v56 = vsel %vm550_vm1, %v524_v47, 0  ;;  %v591_v62 = vand.u32 4294901760, %v590_v54 }
  0xfc   :  { %v454_v39 = vpop.f32.mrf.mxu0 }
  0xfd   :  { %v455_v49 = vadd.f32 %v454_v39, %v392_v42  ;;  %v1361_v12 = vand.u32 4294901760, %v519_v2  ;;  %v1415_v42 = vand.u32 4294901760, %v555_v32 }
  0xff   :  { %v1373_v24 = vsub.f32 %v519_v2, %v1361_v12  ;;  %v1438_v55 = vsub.f32 %v555_v32, %v1415_v42  ;;  %v525_v2 = vld [vmem:[%s1506_s3 + $0x18] sm:$0xff] }
 0x100   :  { %v507_v52 = vpop.f32.mrf.mxu1 }
 0x101   :  { %v508_v29 = vadd.f32 %v507_v52, %v455_v49  ;;  %v642_v35 = vand.u32 4294901760, %v1373_v24  ;;  %v1428_v49 = vsub.f32 %v514_v26, %v1405_v36  ;;  %v649_v52 = vsub.f32 %v1384_v17, %v648_v38 }
 0x102   :  { %v597_v63 = vand.u32 4294901760, %v1438_v55 }
 0x103   :  { %v520_v61 = vmax.f32 %v508_v29, 0.0  ;;  %v643_v45 = vsub.f32 %v1373_v24, %v642_v35  ;;  %v672_v57 = vand.u32 4294901760, %v1428_v49 }
 0x104   :  { %v458_v53 = vpop.f32.mrf.mxu0  ;;  %v598_v4 = vsub.f32 %v1438_v55, %v597_v63 }
 0x105   :  { %v1358_v6 = vand.u32 4294901760, %v520_v61  ;;  %v459_v7 = vadd.f32 %v458_v53, %v398_v0  ;;  %v644_v29 = vand.u32 4294901760, %v643_v45  ;;  %v603_v53 = vand.u32 4294901760, %v558_v56 }
 0x106   :  { %v656_v0 = vand.u32 4294901760, %v655_v58  ;;  %v673_v3 = vsub.f32 %v1428_v49, %v672_v57  ;;  %v599_v8 = vand.u32 4294901760, %v598_v4 }
 0x107   :  { %v1366_v20 = vsub.f32 %v520_v61, %v1358_v6  ;;  %v650_v61 = vand.u32 4294901760, %v649_v52  ;;  %v604_v5 = vsub.f32 %v558_v56, %v603_v53  ;;  %v897_v56 = vld [vmem:[%s1508_s5] sm:$0xff]  ;;  %s1159_s5 = smov [#allocation2]  }
 0x108   :  { %v511_v9 = vpop.f32.mrf.mxu1  ;;  %v674_v10 = vand.u32 4294901760, %v673_v3  ;;  %s1112_s8 = sshll.u32 %s1159_s5, 4  ;;  %s1113_s8 = int_to_ptr.vmem [resolvable:$true] %s1112_s8 }
 0x109   :  { %v512_v13 = vadd.f32 %v511_v9, %v459_v7  ;;  %v636_v30 = vand.u32 4294901760, %v1366_v20  ;;  %v561_v7 = vsel %vm550_vm1, %v525_v2, 0  ;;  %v668_v9 = vand.u32 4294901760, %v667_v1 }
 0x10a   :  { %v605_v11 = vand.u32 4294901760, %v604_v5 }
 0x10b   :  { %v521_v21 = vmax.f32 %v512_v13, 0.0  ;;  %v637_v40 = vsub.f32 %v1366_v20, %v636_v30  ;;  %v611_v13 = vand.u32 4294901760, %v561_v7 }
 0x10c   :  { %v606_v14 = vsub.f32 %v604_v5, %v605_v11 }
 0x10d   :  { %v1375_v19 = vand.u32 4294901760, %v521_v21  ;;  %v638_v51 = vand.u32 4294901760, %v637_v40 }
 0x10f   :  { %v1387_v27 = vsub.f32 %v521_v21, %v1375_v19  ;;  %572 = vmatpush.msrb.mxu2 %v1375_v19  ;;  %861 = vmatpush.msra.mxu1 %v1375_v19  ;;  %v607_v21 = vand.u32 4294901760, %v606_v14 }
 0x111   :  { %574 = vmatpush.msrb.mxu2 %v1358_v6  ;;  %863 = vmatpush.msra.mxu1 %v1358_v6  ;;  %v630_v34 = vand.u32 4294901760, %v1387_v27 }
 0x113   :  { %576 = vmatpush.msrb.mxu2 %v1361_v12  ;;  %806 = vmatpush.msra.mxu0 %v630_v34  ;;  %v631_v39 = vsub.f32 %v1387_v27, %v630_v34  ;;  %v538_v34 = vpop.permute.xlu1 %537 }
 0x114   :  { %865 = vmatpush.msra.mxu1 %v1361_v12 }
 0x115   :  { %578 = vmatpush.msrb.mxu2 %v1363_v18  ;;  %810 = vmatpush.msra.mxu0 %v636_v30  ;;  %v632_v44 = vand.u32 4294901760, %v631_v39 }
 0x116   :  { %867 = vmatpush.msra.mxu1 %v1363_v18 }
 0x117   :  { %580 = vmatpush.msrb.mxu2 %v1370_v23  ;;  %633 = vmatpush.msrb.mxu3 %v632_v44 }
 0x118   :  { %814 = vmatpush.msra.mxu0 %v642_v35  ;;  %869 = vmatpush.msra.mxu1 %v1370_v23 }
 0x119   :  { %582 = vmatpush.msrb.mxu2 %v1381_v28  ;;  %639 = vmatpush.msrb.mxu3 %v638_v51 }
 0x11a   :  { %818 = vmatpush.msra.mxu0 %v648_v38  ;;  %871 = vmatpush.msra.mxu1 %v1381_v28 }
 0x11b   :  { %584 = vmatpush.msrb.mxu2 %v1396_v15  ;;  %645 = vmatpush.msrb.mxu3 %v644_v29 }
 0x11c   :  { %822 = vmatpush.msra.mxu0 %v654_v46  ;;  %873 = vmatpush.msra.mxu1 %v1396_v15 }
 0x11d   :  { %586 = vmatpush.msrb.mxu2 %v1405_v36  ;;  %651 = vmatpush.msrb.mxu3 %v650_v61  ;;  %v905_v61 = vsel %vm87_vm0, %v897_v56, 0 }
 0x11e   :  { %826 = vmatpush.msra.mxu0 %v660_v50  ;;  %875 = vmatpush.msra.mxu1 %v1405_v36  ;;  %v1494_v1 = vand.u32 4294901760, %v905_v61 }
 0x11f   :  { %592 = vmatmul.f32.vlgmr.msrb.gmra.mxu2 %v591_v62  ;;  %657 = vmatpush.msrb.mxu3 %v656_v0 }
 0x120   :  { %703 = vmatpush.msra.mxu2 %v1387_v27  ;;  %830 = vmatpush.msra.mxu0 %v666_v59 }
 0x121   :  { %663 = vmatpush.msrb.mxu3 %v662_v48  ;;  %877 = vmatmul.f32.vlgmr.msra.gmra.mxu1 %v1368_v22 }
 0x122   :  { %706 = vmatpush.msra.mxu2 %v1366_v20  ;;  %834 = vmatpush.msra.mxu0 %v672_v57  ;;  %v612_v20 = vsub.f32 %v561_v7, %v611_v13 }
 0x123   :  { %669 = vmatpush.msrb.mxu3 %v668_v9  ;;  %836 = vmatmul.f32.vlgmr.msra.gmra.mxu0 %v1368_v22 }
 0x124   :  { %709 = vmatpush.msra.mxu2 %v1373_v24  ;;  %v613_v16 = vand.u32 4294901760, %v612_v20 }
 0x125   :  { %675 = vmatpush.msrb.mxu3 %v674_v10 }
 0x126   :  { %712 = vmatpush.msra.mxu2 %v1384_v17  ;;  %677 = vmatmul.f32.vlgmr.msrb.gmra.mxu3 %v1368_v22 }
 0x127   :  { %600 = vmatmul.f32.gmra.mxu2 %v599_v8  ;;  %755 = vmatpush.msra.mxu3 %v1375_v19  ;;  %v928_v8 = vsub.f32 %v905_v61, %v1494_v1 }
 0x128   :  { %715 = vmatpush.msra.mxu2 %v1399_v33 }
 0x129   :  { %757 = vmatpush.msra.mxu3 %v1358_v6  ;;  %881 = vmatmul.f32.gmra.mxu1 %v1415_v42  ;;  %v614_v6 = vsub.f32 %v612_v20, %v613_v16 }
 0x12a   :  { %718 = vmatpush.msra.mxu2 %v1408_v37 }
 0x12b   :  { %759 = vmatpush.msra.mxu3 %v1361_v12  ;;  %840 = vmatmul.f32.gmra.mxu0 %v1415_v42  ;;  %v615_v12 = vand.u32 4294901760, %v614_v6 }
 0x12c   :  { %721 = vmatpush.msra.mxu2 %v1419_v43 }
 0x12d   :  { %761 = vmatpush.msra.mxu3 %v1363_v18 }
 0x12e   :  { %724 = vmatpush.msra.mxu2 %v1428_v49  ;;  %681 = vmatmul.f32.gmra.mxu3 %v1415_v42 }
 0x12f   :  { %608 = vmatmul.f32.gmra.mxu2 %v607_v21  ;;  %763 = vmatpush.msra.mxu3 %v1370_v23 }
 0x131   :  { %765 = vmatpush.msra.mxu3 %v1381_v28  ;;  %885 = vmatmul.f32.gmra.mxu1 %v603_v53 }
 0x133   :  { %767 = vmatpush.msra.mxu3 %v1396_v15  ;;  %844 = vmatmul.f32.gmra.mxu0 %v603_v53 }
 0x135   :  { %769 = vmatpush.msra.mxu3 %v1405_v36 }
 0x136   :  { %685 = vmatmul.f32.gmra.mxu3 %v603_v53 }
 0x137   :  { %616 = vmatmul.f32.gmra.mxu2 %v615_v12 }
 0x139   :  { %889 = vmatmul.f32.gmra.mxu1 %v611_v13 }
 0x13b   :  { %848 = vmatmul.f32.gmra.mxu0 %v611_v13 }
 0x13e   :  { %689 = vmatmul.f32.gmra.mxu3 %v611_v13 }
 0x13f   :  { %727 = vmatmul.f32.vlgmr.msra.gmra.mxu2 %v1393_v31  ;;  %v548_v31 = vpop.permute.xlu2 %547 }
 0x146   :  { %773 = vmatmul.f32.vlgmr.msra.gmra.mxu3 %v589_v41  ;;  %v543_v41 = vpop.permute.xlu0 %542 }
 0x147   :  { %732 = vmatmul.f32.gmra.mxu2 %v1438_v55  ;;  %v533_v37 = vpop.permute.xlu2 %532 }
 0x14e   :  { %779 = vmatmul.f32.gmra.mxu3 %v597_v63 }
 0x14f   :  { %737 = vmatmul.f32.gmra.mxu2 %v604_v5 }
 0x156   :  { %785 = vmatmul.f32.gmra.mxu3 %v605_v11 }
 0x157   :  { %742 = vmatmul.f32.gmra.mxu2 %v612_v20 }
 0x15e   :  { %791 = vmatmul.f32.gmra.mxu3 %v613_v16  ;;  %v929_v16 = vand.u32 4294901760, %v928_v8 }
 0x19e   :  { %v878_v30 = vpop.f32.mrf.mxu1 }
 0x1a0   :  { %v837_v27 = vpop.f32.mrf.mxu0 }
 0x1a2   :  { %v593_v18 = vpop.f32.mrf.mxu2 }
 0x1a3   :  { %v594_v39 = vadd.f32 %v593_v18, %v533_v37 }
 0x1a6   :  { %v882_v35 = vpop.f32.mrf.mxu1 }
 0x1a8   :  { %v841_v33 = vpop.f32.mrf.mxu0 }
 0x1a9   :  { %v678_v22 = vpop.f32.mrf.mxu3 }
 0x1aa   :  { %v601_v23 = vpop.f32.mrf.mxu2  ;;  %v679_v43 = vadd.f32 %v678_v22, %v594_v39 }
 0x1ab   :  { %v602_v36 = vadd.f32 %v601_v23, %v538_v34 }
 0x1ae   :  { %v886_v55 = vpop.f32.mrf.mxu1 }
 0x1b0   :  { %v845_v50 = vpop.f32.mrf.mxu0 }
 0x1b1   :  { %v682_v24 = vpop.f32.mrf.mxu3 }
 0x1b2   :  { %v609_v19 = vpop.f32.mrf.mxu2  ;;  %v683_v40 = vadd.f32 %v682_v24, %v602_v36  ;;  %v930_v24 = vsub.f32 %v928_v8, %v929_v16 }
 0x1b3   :  { %v610_v44 = vadd.f32 %v609_v19, %v543_v41 }
 0x1b6   :  { %v890_v10 = vpop.f32.mrf.mxu1 }
 0x1b8   :  { %v849_v5 = vpop.f32.mrf.mxu0 }
 0x1b9   :  { %v686_v25 = vpop.f32.mrf.mxu3 }
 0x1ba   :  { %v617_v26 = vpop.f32.mrf.mxu2  ;;  %v687_v46 = vadd.f32 %v686_v25, %v610_v44 }
 0x1bb   :  { %v618_v59 = vadd.f32 %v617_v26, %v548_v31 }
 0x1c1   :  { %v690_v28 = vpop.f32.mrf.mxu3 }
 0x1c2   :  { %v728_v17 = vpop.f32.mrf.mxu2  ;;  %v691_v63 = vadd.f32 %v690_v28, %v618_v59 }
 0x1c3   :  { %v729_v47 = vadd.f32 %v728_v17, %v679_v43 }
 0x1c9   :  { %v774_v32 = vpop.f32.mrf.mxu3 }
 0x1ca   :  { %v733_v15 = vpop.f32.mrf.mxu2  ;;  %v775_v51 = vadd.f32 %v774_v32, %v729_v47 }
 0x1cb   :  { %v734_v45 = vadd.f32 %v733_v15, %v683_v40  ;;  %v902_v40 = vpop.permute.xlu0 %901 }
 0x1cc   :  { %v838_v60 = vadd.f32 %v837_v27, %v775_v51  ;;  %v931_v27 = vand.u32 4294901760, %v930_v24 }
 0x1ce   :  { %v879_v2 = vadd.f32 %v878_v30, %v838_v60 }
 0x1d0   :  { %v893_v11 = vmax.f32 %v879_v2, 0.0 }
 0x1d1   :  { %v780_v38 = vpop.f32.mrf.mxu3 }
 0x1d2   :  { %v738_v42 = vpop.f32.mrf.mxu2  ;;  %v781_v49 = vadd.f32 %v780_v38, %v734_v45  ;;  %v925_v6 = vand.u32 4294901760, %v893_v11 }
 0x1d3   :  { %v739_v52 = vadd.f32 %v738_v42, %v687_v46 }
 0x1d4   :  { %v842_v29 = vadd.f32 %v841_v33, %v781_v49  ;;  %v967_v19 = vsub.f32 %v893_v11, %v925_v6 }
 0x1d6   :  { %v883_v53 = vadd.f32 %v882_v35, %v842_v29  ;;  %v968_v32 = vand.u32 4294901760, %v967_v19 }
 0x1d8   :  { %v894_v7 = vmax.f32 %v883_v53, 0.0  ;;  %v969_v35 = vsub.f32 %v967_v19, %v968_v32 }
 0x1d9   :  { %v786_v54 = vpop.f32.mrf.mxu3 }
 0x1da   :  { %v787_v58 = vadd.f32 %v786_v54, %v739_v52  ;;  %v743_v62 = vpop.f32.mrf.mxu2  ;;  %v923_v20 = vand.u32 4294901760, %v894_v7  ;;  %v970_v37 = vand.u32 4294901760, %v969_v35 }
 0x1db   :  { %v744_v48 = vadd.f32 %v743_v62, %v691_v63 }
 0x1dc   :  { %v846_v57 = vadd.f32 %v845_v50, %v787_v58  ;;  %v961_v22 = vsub.f32 %v894_v7, %v923_v20 }
 0x1de   :  { %v887_v0 = vadd.f32 %v886_v55, %v846_v57  ;;  %v962_v17 = vand.u32 4294901760, %v961_v22 }
 0x1e0   :  { %v895_v3 = vmax.f32 %v887_v0, 0.0  ;;  %v963_v33 = vsub.f32 %v961_v22, %v962_v17 }
 0x1e1   :  { %v792_v4 = vpop.f32.mrf.mxu3 }
 0x1e2   :  { %v793_v9 = vadd.f32 %v792_v4, %v744_v48  ;;  %v921_v13 = vand.u32 4294901760, %v895_v3  ;;  %v964_v36 = vand.u32 4294901760, %v963_v33 }
 0x1e4   :  { %v850_v14 = vadd.f32 %v849_v5, %v793_v9  ;;  %v955_v12 = vsub.f32 %v895_v3, %v921_v13 }
 0x1e6   :  { %v891_v21 = vadd.f32 %v890_v10, %v850_v14  ;;  %v956_v26 = vand.u32 4294901760, %v955_v12 }
 0x1e8   :  { %v896_v18 = vmax.f32 %v891_v21, 0.0  ;;  %v957_v31 = vsub.f32 %v955_v12, %v956_v26 }
 0x1ea   :  { %v919_v23 = vand.u32 4294901760, %v896_v18  ;;  %v958_v34 = vand.u32 4294901760, %v957_v31 }
 0x1ec   :  { %v949_v25 = vsub.f32 %v896_v18, %v919_v23  ;;  %920 = vmatpush.msrb.mxu2 %v919_v23 }
 0x1ee   :  { %v950_v28 = vand.u32 4294901760, %v949_v25  ;;  %922 = vmatpush.msrb.mxu2 %v921_v13 }
 0x1f0   :  { %v951_v30 = vsub.f32 %v949_v25, %v950_v28  ;;  %924 = vmatpush.msrb.mxu2 %v923_v20 }
 0x1f2   :  { %926 = vmatpush.msrb.mxu2 %v925_v6  ;;  %v952_v15 = vand.u32 4294901760, %v951_v30 }
 0x1f3   :  { %932 = vmatmul.f32.vlgmr.msrb.gmra.mxu2 %v931_v27 }
 0x1f4   :  { %991 = vmatpush.msra.mxu2 %v949_v25  ;;  %953 = vmatpush.msrb.mxu3 %v952_v15 }
 0x1f6   :  { %994 = vmatpush.msra.mxu2 %v955_v12  ;;  %959 = vmatpush.msrb.mxu3 %v958_v34 }
 0x1f8   :  { %997 = vmatpush.msra.mxu2 %v961_v22  ;;  %965 = vmatpush.msrb.mxu3 %v964_v36 }
 0x1fa   :  { %1000 = vmatpush.msra.mxu2 %v967_v19  ;;  %971 = vmatpush.msrb.mxu3 %v970_v37 }
 0x1fb   :  { %973 = vmatmul.f32.vlgmr.msrb.gmra.mxu3 %v1494_v1  ;;  %1003 = vmatmul.f32.vlgmr.msra.gmra.mxu2 %v928_v8 }
 0x1fc   :  { %1049 = vmatpush.msrb.mxu2 %v950_v28  ;;  %1020 = vmatpush.msra.mxu3 %v919_v23 }
 0x1fe   :  { %1053 = vmatpush.msrb.mxu2 %v956_v26  ;;  %1022 = vmatpush.msra.mxu3 %v921_v13 }
 0x200   :  { %1057 = vmatpush.msrb.mxu2 %v962_v17  ;;  %1024 = vmatpush.msra.mxu3 %v923_v20 }
 0x202   :  { %1061 = vmatpush.msrb.mxu2 %v968_v32  ;;  %1026 = vmatpush.msra.mxu3 %v925_v6 }
 0x203   :  { %1030 = vmatmul.f32.vlgmr.msra.gmra.mxu3 %v929_v16  ;;  %1063 = vmatmul.f32.vlgmr.msrb.gmra.mxu2 %v1494_v1 }
 0x204   :  { %1080 = vmatpush.msrb.mxu3 %v919_v23 }
 0x206   :  { %1082 = vmatpush.msrb.mxu3 %v921_v13 }
 0x208   :  { %1084 = vmatpush.msrb.mxu3 %v923_v20 }
 0x20a   :  { %1086 = vmatpush.msrb.mxu3 %v925_v6 }
 0x20b   :  { %1088 = vmatmul.f32.vlgmr.msrb.gmra.mxu3 %v1494_v1 }
 0x276   :  { %v933_v38 = vpop.f32.mrf.mxu2 }
 0x277   :  { %v934_v42 = vadd.f32 %v933_v38, %v902_v40 }
 0x27e   :  { %v974_v39 = vpop.f32.mrf.mxu3  ;;  %v1004_v41 = vpop.f32.mrf.mxu2 }
 0x27f   :  { %v975_v43 = vadd.f32 %v974_v39, %v934_v42 }
 0x281   :  { %v1005_v45 = vadd.f32 %v1004_v41, %v975_v43 }
 0x286   :  { %v1031_v44 = vpop.f32.mrf.mxu3  ;;  %v1064_v47 = vpop.f32.mrf.mxu2 }
 0x287   :  { %v1032_v46 = vadd.f32 %v1031_v44, %v1005_v45 }
 0x289   :  { %v1065_v49 = vadd.f32 %v1064_v47, %v1032_v46 }
 0x28e   :  { %v1089_v50 = vpop.f32.mrf.mxu3 }
 0x28f   :  { %v1090_v51 = vadd.f32 %v1089_v50, %v1065_v49 }
 0x291   :  { %v1093_v52 = vmin.f32 %v1090_v51, 20.0  ;;  %vm1092_vm3 = vcmp.gt.f32.partialorder %v1090_v51, 20.0 }
 0x293   :  { %v1094_v54 = vmul.f32 1.442695, %v1093_v52 }
 0x295   :  { %1128 = vpow2.f32 %v1094_v54 }
 0x29b   :  { %v1129_v55 = vpop.eup %1128 }
 0x29c   :  { %v1096_v56 = vadd.f32 1.0, %v1129_v55  ;;  %v1099_v29 = vmul.f32 -0.5, %v1129_v55  ;;  %v1102_v59 = vand.u32 2147483647, %v1129_v55 }
 0x29e   :  { %1130 = vlog2.f32 %v1096_v56  ;;  %v1100_v58 = vadd.f32 1.0, %v1099_v29  ;;  %vm1103_vm2 = vcmp.lt.f32.partialorder %v1102_v59, 0.0004427343 }
 0x2a0   :  { %v1101_v61 = vmul.f32 %v1129_v55, %v1100_v58 }
 0x2a4   :  { %v1131_v60 = vpop.eup %1130 }
 0x2a5   :  { %v1098_v57 = vmul.f32 0.6931472, %v1131_v60 }
 0x2a7   :  { %v1104_v62 = vsel %vm1103_vm2, %v1101_v61, %v1098_v57 }
 0x2a8   :  { %v1105_v63 = vsel %vm1092_vm3, %v1090_v51, %v1104_v62 }
 0x2a9   :  { %1106 = vst [vmem:[#allocation2] sm:$0xff] %v1105_v63 }
 0x2aa   :  { %1117 = dma.vmem_to_hbm [thread:$0]  %s1113_s8, 128, %s1115_s11, [#allocation3]  }
 0x2ab   :  { %1156 = dma.done.wait [#allocation3], 128  }
 0x2ac   :  { %1157 = vsyncadd [#allocation3], 4294967168 }
 0x2ad   :  { %1122 = vsyncpa [#allocation3], 1 }

</bundles_post_ra>
